<compile_context>
chip_gen: v5e
topology: v5e:2x2
jax: 0.10.0
libtpu: 0.0.40
codegen_flags: <defaults>
</compile_context>

<pallas_src>
import functools

import jax
import jax.numpy as jnp
from jax.experimental import pallas as pl
from jax.experimental.pallas import tpu as pltpu


def _supcon_kernel(f_row_ref, f_col_ref, lrow_ref, lcol_ref, out_ref,
                   fn_row, m_s, l_s, p_s, c_s, *, inv_temp):
    i = pl.program_id(0)
    j = pl.program_id(1)
    tm = out_ref.shape[0]
    tn = lcol_ref.shape[1]

    @pl.when(j == 0)
    def _init():
        # Normalize + pre-scale the anchor (row) block once per row block and
        # cache it (rsqrt -> EUP; 1/T folded into the row scale).
        f = f_row_ref[...].astype(jnp.float32)
        scale = jax.lax.rsqrt(
            jnp.maximum(jnp.sum(f * f, axis=-1, keepdims=True), 1e-24)
        ) * inv_temp
        fn_row[...] = (f * scale).astype(fn_row.dtype)
        m_s[...] = jnp.full_like(m_s, -jnp.inf)
        l_s[...] = jnp.zeros_like(l_s)
        p_s[...] = jnp.zeros_like(p_s)
        c_s[...] = jnp.zeros_like(c_s)

    # Normalize the contrast (column) block (cheap relative to the matmul).
    fc = f_col_ref[...].astype(jnp.float32)
    c_scale = jax.lax.rsqrt(
        jnp.maximum(jnp.sum(fc * fc, axis=-1, keepdims=True), 1e-24))
    fcn = (fc * c_scale).astype(f_col_ref.dtype)

    # (tm, tn) logits tile: contract both operands on the feature axis so the
    # MXU is fed directly (no transpose), f32 accumulation.
    s = jax.lax.dot_general(
        fn_row[...], fcn,
        dimension_numbers=(((1,), (1,)), ((), ())),
        preferred_element_type=jnp.float32)

    # Online softmax bookkeeping (max includes the diagonal, matching torch).
    m_old = m_s[...]
    m_new = jnp.maximum(m_old, jnp.max(s, axis=1, keepdims=True))
    alpha = jnp.exp(m_old - m_new)
    m_s[...] = m_new

    label_eq = lrow_ref[...] == lcol_ref[...]

    def accumulate(e, pos):
        # exp-sum (diag excluded upstream), positive-logit sum and count.
        l_s[...] = alpha * l_s[...] + jnp.sum(e, axis=1, keepdims=True)
        p_s[...] += jnp.sum(jnp.where(pos, s, 0.0), axis=1, keepdims=True)
        c_s[...] += jnp.sum(pos.astype(jnp.float32), axis=1, keepdims=True)

    # Does this tile intersect the global diagonal at all?  Only those tiles
    # pay for the iota-based diag mask; all other tiles take the lean path.
    touches_diag = jnp.logical_and(i * tm < (j + 1) * tn,
                                   j * tn < (i + 1) * tm)

    @pl.when(touches_diag)
    def _diag_tile():
        delta = j * tn - i * tm
        rc = (jax.lax.broadcasted_iota(jnp.int32, (tm, tn), 0)
              - jax.lax.broadcasted_iota(jnp.int32, (tm, tn), 1))
        diag = rc == delta
        e = jnp.where(diag, 0.0, jnp.exp(s - m_new))
        pos = jnp.logical_and(label_eq, jnp.logical_not(diag))
        accumulate(e, pos)

    @pl.when(jnp.logical_not(touches_diag))
    def _offdiag_tile():
        accumulate(jnp.exp(s - m_new), label_eq)

    @pl.when(j == pl.num_programs(1) - 1)
    def _finalize():
        m = m_s[...]
        log_denom = jnp.log(l_s[...] + 1e-6)
        cnt = c_s[...]
        cnt_full = cnt + 1.0          # the diagonal is always a same-label pair
        # sum_j mask*log_prob = (p_raw - cnt*M) - cnt_full*log_denom
        # (approx=True reciprocal is too coarse for the 1e-5 exactness check).
        mlpp = (p_s[...] - cnt * m - cnt_full * log_denom) * pl.reciprocal(
            cnt_full + 1e-6, approx=False)
        out_ref[...] = mlpp


def _pick_tile(b, cap=256):
    if b <= cap:
        return b
    for t in (cap, 128):
        if b % t == 0:
            return t
    return b  # fall back to a single full block


def supcon_loss(features, labels, temperature: float = 0.1,
                block_rows: int | None = None, block_cols: int | None = None):
    """Pallas TPU implementation of SupConLoss.forward(features, labels)."""
    B, D = features.shape
    tm = block_rows or _pick_tile(B)
    tn = block_cols or _pick_tile(B)
    assert B % tm == 0 and B % tn == 0, (B, tm, tn)

    labels_row = labels.reshape(B, 1).astype(jnp.int32)
    labels_col = labels.reshape(1, B).astype(jnp.int32)

    kernel = functools.partial(_supcon_kernel, inv_temp=float(1.0 / temperature))

    mlpp = pl.pallas_call(
        kernel,
        out_shape=jax.ShapeDtypeStruct((B, 1), jnp.float32),
        grid_spec=pltpu.PrefetchScalarGridSpec(
            num_scalar_prefetch=0,
            grid=(B // tm, B // tn),
            in_specs=[
                pl.BlockSpec((tm, D), lambda i, j: (i, 0)),  # anchor rows
                pl.BlockSpec((tn, D), lambda i, j: (j, 0)),  # contrast cols
                pl.BlockSpec((tm, 1), lambda i, j: (i, 0)),  # row labels
                pl.BlockSpec((1, tn), lambda i, j: (0, j)),  # col labels
            ],
            out_specs=pl.BlockSpec((tm, 1), lambda i, j: (i, 0)),
            scratch_shapes=[
                pltpu.VMEM((tm, D), features.dtype),   # cached normalized rows
                pltpu.VMEM((tm, 1), jnp.float32),      # running max
                pltpu.VMEM((tm, 1), jnp.float32),      # running exp-sum
                pltpu.VMEM((tm, 1), jnp.float32),      # sum of positive logits
                pltpu.VMEM((tm, 1), jnp.float32),      # count of positives
            ],
        ),
        compiler_params=pltpu.CompilerParams(
            dimension_semantics=("parallel", "arbitrary")),
    )(features, features, labels_row, labels_col)

    # Tiny final reduction across anchors done in the wrapper.
    return -jnp.mean(mlpp)


def _reference_supcon(features, labels, temperature=0.1):
    # pure-JAX reference mirroring the PyTorch module exactly
    f = features / jnp.maximum(
        jnp.linalg.norm(features, axis=-1, keepdims=True), 1e-12)
    B = f.shape[0]
    mask = (labels[:, None] == labels[None, :]).astype(jnp.float32)
    sim = (f @ f.T) / temperature
    sim = sim - jnp.max(sim, axis=1, keepdims=True)
    logits_mask = jnp.ones((B, B), jnp.float32) - jnp.eye(B, dtype=jnp.float32)
    sim = sim * logits_mask
    exp_sim = jnp.exp(sim) * logits_mask
    log_prob = sim - jnp.log(jnp.sum(exp_sim, axis=1, keepdims=True) + 1e-6)
    mlpp = jnp.sum(mask * log_prob, axis=1) / (jnp.sum(mask, axis=1) + 1e-6)
    return -jnp.mean(mlpp)


if __name__ == "__main__":
    key = jax.random.PRNGKey(0)

    # Case 1: small, module-sized example (single tile, diagonal path).
    k_feat, k_lab = jax.random.split(key)
    B, D = 8, 32
    features = jax.random.normal(k_feat, (B, D), dtype=jnp.float32)
    labels = jax.random.randint(k_lab, (B,), 0, 3, dtype=jnp.int32)

    loss = jax.block_until_ready(supcon_loss(features, labels, temperature=0.1))
    ref = _reference_supcon(features, labels, temperature=0.1)
    assert jnp.isfinite(loss), "loss is not finite"
    assert jnp.allclose(loss, ref, rtol=1e-5, atol=1e-5), (loss, ref)

    # Case 2: exercise the tiled online-softmax path with both the diagonal
    # and off-diagonal tile branches (2x2 grid of blocks).
    k_feat2, k_lab2 = jax.random.split(jax.random.PRNGKey(1))
    B2, D2 = 256, 64
    features2 = jax.random.normal(k_feat2, (B2, D2), dtype=jnp.float32)
    labels2 = jax.random.randint(k_lab2, (B2,), 0, 3, dtype=jnp.int32)

    loss2 = jax.block_until_ready(
        supcon_loss(features2, labels2, temperature=0.1,
                    block_rows=128, block_cols=128))
    ref2 = _reference_supcon(features2, labels2, temperature=0.1)
    assert jnp.isfinite(loss2), "tiled loss is not finite"
    assert jnp.allclose(loss2, ref2, rtol=5e-5, atol=5e-5), (loss2, ref2)

    print("KERNEL_OK")
</pallas_src>

<mosaic_0001>
module attributes {stable_mosaic.version = 11 : i64} {
  func.func @_supcon_kernel(%arg0: i32, %arg1: i32, %arg2: memref<8x32xf32, #tpu.memory_space<vmem>>, %arg3: memref<8x32xf32, #tpu.memory_space<vmem>>, %arg4: memref<8x1xi32, #tpu.memory_space<vmem>>, %arg5: memref<1x8xi32, #tpu.memory_space<vmem>>, %arg6: memref<8x1xf32, #tpu.memory_space<vmem>>, %arg7: memref<8x32xf32, #tpu.memory_space<vmem>>, %arg8: memref<8x1xf32, #tpu.memory_space<vmem>>, %arg9: memref<8x1xf32, #tpu.memory_space<vmem>>, %arg10: memref<8x1xf32, #tpu.memory_space<vmem>>, %arg11: memref<8x1xf32, #tpu.memory_space<vmem>>) attributes {dimension_semantics = [#tpu.dimension_semantics<parallel>, #tpu.dimension_semantics<arbitrary>], iteration_bounds = array<i64: 1, 1>, scalar_prefetch = 0 : i64, scratch_operands = 5 : i64, tpu.core_type = #tpu.core_type<tc>, window_params = [{transform_indices = @transform_0, window_bounds = array<i64: 8, 32>}, {transform_indices = @transform_1, window_bounds = array<i64: 8, 32>}, {transform_indices = @transform_2, window_bounds = array<i64: 8, 1>}, {transform_indices = @transform_3, window_bounds = array<i64: 1, 8>}, {transform_indices = @transform_4, window_bounds = array<i64: 8, 1>}]} {
    %c0_i32 = arith.constant 0 : i32
    %0 = arith.cmpi eq, %arg1, %c0_i32 : i32
    %1 = arith.extui %0 : i1 to i32
    %c0_i32_0 = arith.constant 0 : i32
    %2 = arith.cmpi ne, %1, %c0_i32_0 : i32
    scf.if %2 {
      %c0_23 = arith.constant 0 : index
      %c0_24 = arith.constant 0 : index
      %43 = vector.load %arg2[%c0_23, %c0_24] : memref<8x32xf32, #tpu.memory_space<vmem>>, vector<8x32xf32>
      %44 = arith.mulf %43, %43 : vector<8x32xf32>
      %cst_25 = arith.constant dense<0.000000e+00> : vector<8xf32>
      %45 = vector.multi_reduction <add>, %44, %cst_25 [1] : vector<8x32xf32> to vector<8xf32>
      %46 = vector.shape_cast %45 : vector<8xf32> to vector<8x1xf32>
      %cst_26 = arith.constant 1.000000e-24 : f32
      %47 = vector.broadcast %cst_26 : f32 to vector<8x1xf32>
      %48 = arith.maximumf %46, %47 : vector<8x1xf32>
      %49 = math.rsqrt %48 : vector<8x1xf32>
      %cst_27 = arith.constant 1.000000e+01 : f32
      %50 = vector.broadcast %cst_27 : f32 to vector<8x1xf32>
      %51 = arith.mulf %49, %50 : vector<8x1xf32>
      %52 = vector.broadcast %51 : vector<8x1xf32> to vector<8x32xf32>
      %53 = arith.mulf %43, %52 : vector<8x32xf32>
      %c0_28 = arith.constant 0 : index
      %c0_29 = arith.constant 0 : index
      %54 = vector.load %arg7[%c0_28, %c0_29] : memref<8x32xf32, #tpu.memory_space<vmem>>, vector<8x32xf32>
      tpu.vector_store %arg7[%c0_28, %c0_29], %53 {strides = array<i32>} : memref<8x32xf32, #tpu.memory_space<vmem>>, vector<8x32xf32>,
      %cst_30 = arith.constant 0xFF800000 : f32
      %55 = vector.broadcast %cst_30 : f32 to vector<8x1xf32>
      %c0_31 = arith.constant 0 : index
      %c0_32 = arith.constant 0 : index
      %56 = vector.load %arg8[%c0_31, %c0_32] : memref<8x1xf32, #tpu.memory_space<vmem>>, vector<8x1xf32>
      tpu.vector_store %arg8[%c0_31, %c0_32], %55 {strides = array<i32>} : memref<8x1xf32, #tpu.memory_space<vmem>>, vector<8x1xf32>,
      %cst_33 = arith.constant 0.000000e+00 : f32
      %57 = vector.broadcast %cst_33 : f32 to vector<8x1xf32>
      %c0_34 = arith.constant 0 : index
      %c0_35 = arith.constant 0 : index
      %58 = vector.load %arg9[%c0_34, %c0_35] : memref<8x1xf32, #tpu.memory_space<vmem>>, vector<8x1xf32>
      tpu.vector_store %arg9[%c0_34, %c0_35], %57 {strides = array<i32>} : memref<8x1xf32, #tpu.memory_space<vmem>>, vector<8x1xf32>,
      %cst_36 = arith.constant 0.000000e+00 : f32
      %59 = vector.broadcast %cst_36 : f32 to vector<8x1xf32>
      %c0_37 = arith.constant 0 : index
      %c0_38 = arith.constant 0 : index
      %60 = vector.load %arg10[%c0_37, %c0_38] : memref<8x1xf32, #tpu.memory_space<vmem>>, vector<8x1xf32>
      tpu.vector_store %arg10[%c0_37, %c0_38], %59 {strides = array<i32>} : memref<8x1xf32, #tpu.memory_space<vmem>>, vector<8x1xf32>,
      %cst_39 = arith.constant 0.000000e+00 : f32
      %61 = vector.broadcast %cst_39 : f32 to vector<8x1xf32>
      %c0_40 = arith.constant 0 : index
      %c0_41 = arith.constant 0 : index
      %62 = vector.load %arg11[%c0_40, %c0_41] : memref<8x1xf32, #tpu.memory_space<vmem>>, vector<8x1xf32>
      tpu.vector_store %arg11[%c0_40, %c0_41], %61 {strides = array<i32>} : memref<8x1xf32, #tpu.memory_space<vmem>>, vector<8x1xf32>,
    } else {
    }
    %c0 = arith.constant 0 : index
    %c0_1 = arith.constant 0 : index
    %3 = vector.load %arg3[%c0, %c0_1] : memref<8x32xf32, #tpu.memory_space<vmem>>, vector<8x32xf32>
    %4 = arith.mulf %3, %3 : vector<8x32xf32>
    %cst = arith.constant dense<0.000000e+00> : vector<8xf32>
    %5 = vector.multi_reduction <add>, %4, %cst [1] : vector<8x32xf32> to vector<8xf32>
    %6 = vector.shape_cast %5 : vector<8xf32> to vector<8x1xf32>
    %cst_2 = arith.constant 1.000000e-24 : f32
    %7 = vector.broadcast %cst_2 : f32 to vector<8x1xf32>
    %8 = arith.maximumf %6, %7 : vector<8x1xf32>
    %9 = math.rsqrt %8 : vector<8x1xf32>
    %10 = vector.broadcast %9 : vector<8x1xf32> to vector<8x32xf32>
    %11 = arith.mulf %3, %10 : vector<8x32xf32>
    %c0_3 = arith.constant 0 : index
    %c0_4 = arith.constant 0 : index
    %12 = vector.load %arg7[%c0_3, %c0_4] : memref<8x32xf32, #tpu.memory_space<vmem>>, vector<8x32xf32>
    %cst_5 = arith.constant dense<0.000000e+00> : vector<8x8xf32>
    %13 = tpu.matmul %12, %11, %cst_5 {dimension_numbers = #tpu.dot_dimension_numbers<[1], [1], [0], [0], [0, 0, 1, 0], [], []>} : vector<8x32xf32>, vector<8x32xf32>, vector<8x8xf32> -> vector<8x8xf32>
    %c0_6 = arith.constant 0 : index
    %c0_7 = arith.constant 0 : index
    %14 = vector.load %arg8[%c0_6, %c0_7] : memref<8x1xf32, #tpu.memory_space<vmem>>, vector<8x1xf32>
    %cst_8 = arith.constant dense<0xFF800000> : vector<8xf32>
    %15 = vector.multi_reduction <maximumf>, %13, %cst_8 [1] : vector<8x8xf32> to vector<8xf32>
    %16 = vector.shape_cast %15 : vector<8xf32> to vector<8x1xf32>
    %17 = arith.maximumf %14, %16 : vector<8x1xf32>
    %18 = arith.subf %14, %17 : vector<8x1xf32>
    %19 = math.exp %18 : vector<8x1xf32>
    %c0_9 = arith.constant 0 : index
    %c0_10 = arith.constant 0 : index
    %20 = vector.load %arg8[%c0_9, %c0_10] : memref<8x1xf32, #tpu.memory_space<vmem>>, vector<8x1xf32>
    tpu.vector_store %arg8[%c0_9, %c0_10], %17 {strides = array<i32>} : memref<8x1xf32, #tpu.memory_space<vmem>>, vector<8x1xf32>,
    %c0_11 = arith.constant 0 : index
    %c0_12 = arith.constant 0 : index
    %21 = vector.load %arg4[%c0_11, %c0_12] : memref<8x1xi32, #tpu.memory_space<vmem>>, vector<8x1xi32>
    %c0_13 = arith.constant 0 : index
    %c0_14 = arith.constant 0 : index
    %22 = vector.load %arg5[%c0_13, %c0_14] : memref<1x8xi32, #tpu.memory_space<vmem>>, vector<1x8xi32>
    %23 = vector.broadcast %21 : vector<8x1xi32> to vector<8x8xi32>
    %24 = vector.broadcast %22 : vector<1x8xi32> to vector<8x8xi32>
    %25 = arith.cmpi eq, %23, %24 : vector<8x8xi32>
    %c8_i32 = arith.constant 8 : i32
    %26 = arith.muli %arg0, %c8_i32 : i32
    %c1_i32 = arith.constant 1 : i32
    %27 = arith.addi %arg1, %c1_i32 : i32
    %c8_i32_15 = arith.constant 8 : i32
    %28 = arith.muli %27, %c8_i32_15 : i32
    %29 = arith.cmpi slt, %26, %28 : i32
    %c8_i32_16 = arith.constant 8 : i32
    %30 = arith.muli %arg1, %c8_i32_16 : i32
    %c1_i32_17 = arith.constant 1 : i32
    %31 = arith.addi %arg0, %c1_i32_17 : i32
    %c8_i32_18 = arith.constant 8 : i32
    %32 = arith.muli %31, %c8_i32_18 : i32
    %33 = arith.cmpi slt, %30, %32 : i32
    %34 = arith.andi %29, %33 : i1
    %35 = arith.extui %34 : i1 to i32
    %c0_i32_19 = arith.constant 0 : i32
    %36 = arith.cmpi ne, %35, %c0_i32_19 : i32
    scf.if %36 {
      %c8_i32_23 = arith.constant 8 : i32
      %43 = arith.muli %arg1, %c8_i32_23 : i32
      %c8_i32_24 = arith.constant 8 : i32
      %44 = arith.muli %arg0, %c8_i32_24 : i32
      %45 = arith.subi %43, %44 : i32
      %46 = tpu.iota {dimensions = array<i32: 0>} : vector<8x8xi32>
      %47 = tpu.iota {dimensions = array<i32: 1>} : vector<8x8xi32>
      %48 = arith.subi %46, %47 : vector<8x8xi32>
      %49 = vector.broadcast %45 : i32 to vector<8x8xi32>
      %50 = arith.cmpi eq, %48, %49 : vector<8x8xi32>
      %51 = vector.broadcast %17 : vector<8x1xf32> to vector<8x8xf32>
      %52 = arith.subf %13, %51 : vector<8x8xf32>
      %53 = math.exp %52 : vector<8x8xf32>
      %cst_25 = arith.constant 0.000000e+00 : f32
      %54 = vector.broadcast %cst_25 : f32 to vector<8x8xf32>
      %55 = arith.select %50, %54, %53 : vector<8x8xi1>, vector<8x8xf32>
      %cst_26 = arith.constant dense<true> : vector<8x8xi1>
      %56 = arith.xori %50, %cst_26 : vector<8x8xi1>
      %57 = arith.andi %25, %56 : vector<8x8xi1>
      %c0_27 = arith.constant 0 : index
      %c0_28 = arith.constant 0 : index
      %58 = vector.load %arg9[%c0_27, %c0_28] : memref<8x1xf32, #tpu.memory_space<vmem>>, vector<8x1xf32>
      %59 = arith.mulf %19, %58 : vector<8x1xf32>
      %cst_29 = arith.constant dense<0.000000e+00> : vector<8xf32>
      %60 = vector.multi_reduction <add>, %55, %cst_29 [1] : vector<8x8xf32> to vector<8xf32>
      %61 = vector.shape_cast %60 : vector<8xf32> to vector<8x1xf32>
      %62 = arith.addf %59, %61 : vector<8x1xf32>
      %c0_30 = arith.constant 0 : index
      %c0_31 = arith.constant 0 : index
      %63 = vector.load %arg9[%c0_30, %c0_31] : memref<8x1xf32, #tpu.memory_space<vmem>>, vector<8x1xf32>
      tpu.vector_store %arg9[%c0_30, %c0_31], %62 {strides = array<i32>} : memref<8x1xf32, #tpu.memory_space<vmem>>, vector<8x1xf32>,
      %c0_32 = arith.constant 0 : index
      %c0_33 = arith.constant 0 : index
      %64 = vector.load %arg10[%c0_32, %c0_33] : memref<8x1xf32, #tpu.memory_space<vmem>>, vector<8x1xf32>
      %cst_34 = arith.constant 0.000000e+00 : f32
      %65 = vector.broadcast %cst_34 : f32 to vector<8x8xf32>
      %66 = arith.select %57, %13, %65 : vector<8x8xi1>, vector<8x8xf32>
      %cst_35 = arith.constant dense<0.000000e+00> : vector<8xf32>
      %67 = vector.multi_reduction <add>, %66, %cst_35 [1] : vector<8x8xf32> to vector<8xf32>
      %68 = vector.shape_cast %67 : vector<8xf32> to vector<8x1xf32>
      %69 = arith.addf %64, %68 : vector<8x1xf32>
      %c0_36 = arith.constant 0 : index
      %c0_37 = arith.constant 0 : index
      %70 = vector.load %arg10[%c0_36, %c0_37] : memref<8x1xf32, #tpu.memory_space<vmem>>, vector<8x1xf32>
      tpu.vector_store %arg10[%c0_36, %c0_37], %69 {strides = array<i32>} : memref<8x1xf32, #tpu.memory_space<vmem>>, vector<8x1xf32>,
      %c0_38 = arith.constant 0 : index
      %c0_39 = arith.constant 0 : index
      %71 = vector.load %arg11[%c0_38, %c0_39] : memref<8x1xf32, #tpu.memory_space<vmem>>, vector<8x1xf32>
      %72 = arith.extui %57 : vector<8x8xi1> to vector<8x8xi32>
      %73 = arith.sitofp %72 : vector<8x8xi32> to vector<8x8xf32>
      %cst_40 = arith.constant dense<0.000000e+00> : vector<8xf32>
      %74 = vector.multi_reduction <add>, %73, %cst_40 [1] : vector<8x8xf32> to vector<8xf32>
      %75 = vector.shape_cast %74 : vector<8xf32> to vector<8x1xf32>
      %76 = arith.addf %71, %75 : vector<8x1xf32>
      %c0_41 = arith.constant 0 : index
      %c0_42 = arith.constant 0 : index
      %77 = vector.load %arg11[%c0_41, %c0_42] : memref<8x1xf32, #tpu.memory_space<vmem>>, vector<8x1xf32>
      tpu.vector_store %arg11[%c0_41, %c0_42], %76 {strides = array<i32>} : memref<8x1xf32, #tpu.memory_space<vmem>>, vector<8x1xf32>,
    } else {
    }
    %true = arith.constant true
    %37 = arith.xori %34, %true : i1
    %38 = arith.extui %37 : i1 to i32
    %c0_i32_20 = arith.constant 0 : i32
    %39 = arith.cmpi ne, %38, %c0_i32_20 : i32
    scf.if %39 {
      %43 = vector.broadcast %17 : vector<8x1xf32> to vector<8x8xf32>
      %44 = arith.subf %13, %43 : vector<8x8xf32>
      %45 = math.exp %44 : vector<8x8xf32>
      %c0_23 = arith.constant 0 : index
      %c0_24 = arith.constant 0 : index
      %46 = vector.load %arg9[%c0_23, %c0_24] : memref<8x1xf32, #tpu.memory_space<vmem>>, vector<8x1xf32>
      %47 = arith.mulf %19, %46 : vector<8x1xf32>
      %cst_25 = arith.constant dense<0.000000e+00> : vector<8xf32>
      %48 = vector.multi_reduction <add>, %45, %cst_25 [1] : vector<8x8xf32> to vector<8xf32>
      %49 = vector.shape_cast %48 : vector<8xf32> to vector<8x1xf32>
      %50 = arith.addf %47, %49 : vector<8x1xf32>
      %c0_26 = arith.constant 0 : index
      %c0_27 = arith.constant 0 : index
      %51 = vector.load %arg9[%c0_26, %c0_27] : memref<8x1xf32, #tpu.memory_space<vmem>>, vector<8x1xf32>
      tpu.vector_store %arg9[%c0_26, %c0_27], %50 {strides = array<i32>} : memref<8x1xf32, #tpu.memory_space<vmem>>, vector<8x1xf32>,
      %c0_28 = arith.constant 0 : index
      %c0_29 = arith.constant 0 : index
      %52 = vector.load %arg10[%c0_28, %c0_29] : memref<8x1xf32, #tpu.memory_space<vmem>>, vector<8x1xf32>
      %cst_30 = arith.constant 0.000000e+00 : f32
      %53 = vector.broadcast %cst_30 : f32 to vector<8x8xf32>
      %54 = arith.select %25, %13, %53 : vector<8x8xi1>, vector<8x8xf32>
      %cst_31 = arith.constant dense<0.000000e+00> : vector<8xf32>
      %55 = vector.multi_reduction <add>, %54, %cst_31 [1] : vector<8x8xf32> to vector<8xf32>
      %56 = vector.shape_cast %55 : vector<8xf32> to vector<8x1xf32>
      %57 = arith.addf %52, %56 : vector<8x1xf32>
      %c0_32 = arith.constant 0 : index
      %c0_33 = arith.constant 0 : index
      %58 = vector.load %arg10[%c0_32, %c0_33] : memref<8x1xf32, #tpu.memory_space<vmem>>, vector<8x1xf32>
      tpu.vector_store %arg10[%c0_32, %c0_33], %57 {strides = array<i32>} : memref<8x1xf32, #tpu.memory_space<vmem>>, vector<8x1xf32>,
      %c0_34 = arith.constant 0 : index
      %c0_35 = arith.constant 0 : index
      %59 = vector.load %arg11[%c0_34, %c0_35] : memref<8x1xf32, #tpu.memory_space<vmem>>, vector<8x1xf32>
      %60 = arith.extui %25 : vector<8x8xi1> to vector<8x8xi32>
      %61 = arith.sitofp %60 : vector<8x8xi32> to vector<8x8xf32>
      %cst_36 = arith.constant dense<0.000000e+00> : vector<8xf32>
      %62 = vector.multi_reduction <add>, %61, %cst_36 [1] : vector<8x8xf32> to vector<8xf32>
      %63 = vector.shape_cast %62 : vector<8xf32> to vector<8x1xf32>
      %64 = arith.addf %59, %63 : vector<8x1xf32>
      %c0_37 = arith.constant 0 : index
      %c0_38 = arith.constant 0 : index
      %65 = vector.load %arg11[%c0_37, %c0_38] : memref<8x1xf32, #tpu.memory_space<vmem>>, vector<8x1xf32>
      tpu.vector_store %arg11[%c0_37, %c0_38], %64 {strides = array<i32>} : memref<8x1xf32, #tpu.memory_space<vmem>>, vector<8x1xf32>,
    } else {
    }
    %c0_i32_21 = arith.constant 0 : i32
    %40 = arith.cmpi eq, %arg1, %c0_i32_21 : i32
    %41 = arith.extui %40 : i1 to i32
    %c0_i32_22 = arith.constant 0 : i32
    %42 = arith.cmpi ne, %41, %c0_i32_22 : i32
    scf.if %42 {
      %c0_23 = arith.constant 0 : index
      %c0_24 = arith.constant 0 : index
      %43 = vector.load %arg8[%c0_23, %c0_24] : memref<8x1xf32, #tpu.memory_space<vmem>>, vector<8x1xf32>
      %c0_25 = arith.constant 0 : index
      %c0_26 = arith.constant 0 : index
      %44 = vector.load %arg9[%c0_25, %c0_26] : memref<8x1xf32, #tpu.memory_space<vmem>>, vector<8x1xf32>
      %cst_27 = arith.constant 9.99999997E-7 : f32
      %45 = vector.broadcast %cst_27 : f32 to vector<8x1xf32>
      %46 = arith.addf %44, %45 : vector<8x1xf32>
      %47 = math.log %46 : vector<8x1xf32>
      %c0_28 = arith.constant 0 : index
      %c0_29 = arith.constant 0 : index
      %48 = vector.load %arg11[%c0_28, %c0_29] : memref<8x1xf32, #tpu.memory_space<vmem>>, vector<8x1xf32>
      %cst_30 = arith.constant 1.000000e+00 : f32
      %49 = vector.broadcast %cst_30 : f32 to vector<8x1xf32>
      %50 = arith.addf %48, %49 : vector<8x1xf32>
      %c0_31 = arith.constant 0 : index
      %c0_32 = arith.constant 0 : index
      %51 = vector.load %arg10[%c0_31, %c0_32] : memref<8x1xf32, #tpu.memory_space<vmem>>, vector<8x1xf32>
      %52 = arith.mulf %48, %43 : vector<8x1xf32>
      %53 = arith.subf %51, %52 : vector<8x1xf32>
      %54 = arith.mulf %50, %47 : vector<8x1xf32>
      %55 = arith.subf %53, %54 : vector<8x1xf32>
      %cst_33 = arith.constant 9.99999997E-7 : f32
      %56 = vector.broadcast %cst_33 : f32 to vector<8x1xf32>
      %57 = arith.addf %50, %56 : vector<8x1xf32>
      %58 = tpu.reciprocal %57 : vector<8x1xf32> -> vector<8x1xf32>
      %59 = arith.mulf %55, %58 : vector<8x1xf32>
      %c0_34 = arith.constant 0 : index
      %c0_35 = arith.constant 0 : index
      %60 = vector.load %arg6[%c0_34, %c0_35] : memref<8x1xf32, #tpu.memory_space<vmem>>, vector<8x1xf32>
      tpu.vector_store %arg6[%c0_34, %c0_35], %59 {strides = array<i32>} : memref<8x1xf32, #tpu.memory_space<vmem>>, vector<8x1xf32>,
    } else {
    }
    return
  }
  func.func @transform_0(%arg0: i32, %arg1: i32) -> (i32, i32) {
    %c0_i32 = arith.constant 0 : i32
    %c0_i32_0 = arith.constant 0 : i32
    return %arg0, %c0_i32 : i32, i32
  }
  func.func @transform_1(%arg0: i32, %arg1: i32) -> (i32, i32) {
    %c0_i32 = arith.constant 0 : i32
    %c0_i32_0 = arith.constant 0 : i32
    return %arg1, %c0_i32 : i32, i32
  }
  func.func @transform_2(%arg0: i32, %arg1: i32) -> (i32, i32) {
    %c0_i32 = arith.constant 0 : i32
    %c0_i32_0 = arith.constant 0 : i32
    return %arg0, %c0_i32 : i32, i32
  }
  func.func @transform_3(%arg0: i32, %arg1: i32) -> (i32, i32) {
    %c0_i32 = arith.constant 0 : i32
    %c0_i32_0 = arith.constant 0 : i32
    return %c0_i32, %arg1 : i32, i32
  }
  func.func @transform_4(%arg0: i32, %arg1: i32) -> (i32, i32) {
    %c0_i32 = arith.constant 0 : i32
    %c0_i32_0 = arith.constant 0 : i32
    return %arg0, %c0_i32 : i32, i32
  }
}

</mosaic_0001>

<bundles_post_ra>
// kernel: tpu_custom_call.1
= control target key start
LH: loop header
LB: loop body
LE: loop exit
PB: predicated region body
PF: predicated region fallthrough
CT: control target
= control target key end

     0   :  { %9 = vsyncpa [#allocation8], 0  ;;  %s297_s18 = smov [#allocation7]   ;;  %s376_s0 = inlined_call_operand.vmem [shape: f32[8,32], index: 0, kind: input, shape index: {}]   ;;  %s377_s1 = inlined_call_operand.hbm [shape: f32[8,32], index: 1, kind: input, shape index: {}]   ;;  %s378_s2 = inlined_call_operand.vmem [shape: s32[8,1], index: 2, kind: input, shape index: {}]   ;;  %s379_s3 = inlined_call_operand.vmem [shape: s32[1,8], index: 3, kind: input, shape index: {}]   ;;  %s380_s4 = inlined_call_operand.vmem [shape: f32[8,1], index: 4, kind: output, shape index: {}]  }
   0x1   :  { %s17_s17 = sshll.u32 %s377_s1, 4  ;;  %s19_s19 = sshll.u32 %s297_s18, 4  ;;  %s18_s17 = int_to_ptr.hbm [resolvable:$true] %s17_s17  ;;  %s20_s19 = int_to_ptr.vmem [resolvable:$true] %s19_s19 }
   0x2   :  { %22 = dma.hbm_to_vmem [thread:$0]  %s18_s17, 128, %s20_s19, [#allocation8]  }
   0x3   :  { %295 = dma.done.wait [#allocation8], 128  }
   0x4   :  { %296 = vsyncadd [#allocation8], 4294967168  ;;  %v35_v0 = vld [vmem:[%s376_s0] sm:$0xff]  ;;  %vm37_vm0 = vcmask 261120   ;;  %v60_v2 = vld [vmem:[#allocation7] sm:$0xff]  ;;  %v298_v9 = vmov 0   ;;  %v136_v30 = vlaneseq }
   0x5   :  { %v36_v1 = vmul.f32 %v35_v0, %v35_v0  ;;  %v61_v4 = vmul.f32 %v60_v2, %v60_v2  ;;  %v116_v8 = vld [vmem:[%s378_s2] sm:$0xff]  ;;  %256 = vset.pattern.permute.xlu2 %v298_v9  ;;  %255 = vset.pattern.permute.xlu1 %v298_v9  ;;  %vm299_vm8 = vmmov 1   ;;  %vm55_vm12 = vcmask 7168  }
   0x6   :  { %119 = vperm.xlu2 %256, %v116_v8   ;;  %257 = vset.pattern.permute.xlu0 %v298_v9  ;;  %v137_v31 = vshrl.u32 %v136_v30, 7  ;;  %v139_v32 = vand.u32 127, %v136_v30  ;;  %v258_v34 = vld [vmem:[%s379_s3] ss:$0 sm:$0xff]  ;;  %vm106_vm13 = vcmask 64512   ;;  %v300_v38 = vmov 0.0  }
   0x7   :  { %v38_v3 = vsel %vm37_vm0, %v36_v1, 0.0  ;;  %v63_v5 = vsel %vm37_vm0, %v61_v4, 0.0  ;;  %57 = vst.msk [vmem:[#allocation4] sm:$0xff] %vm55_vm12, %v300_v38  ;;  %v301_v43 = vmov -inf  }
   0x8   :  { %39 = vadd.xlane.f32.xlu0 %v38_v3  ;;  %v140_v33 = vsub.s32 %v137_v31, %v139_v32  ;;  %58 = vst.msk [vmem:[#allocation5] sm:$0xff] %vm55_vm12, %v300_v38 }
   0x9   :  { %59 = vst.msk [vmem:[#allocation6] sm:$0xff] %vm55_vm12, %v300_v38 }
   0xa   :  { %vm344_vm7 = vcmp.eq.s32.totalorder %v140_v33, 0  ;;  %56 = vst.msk [vmem:[#allocation3] sm:$0xff] %vm55_vm12, %v301_v43 }
   0xb   :  { %vm152_vm9 = vmxor %vm344_vm7, %vm299_vm8 }
  0x10   :  { %64 = vadd.xlane.f32.xlu0 %v63_v5  ;;  %v168_v44 = vld [vmem:[#allocation6] sm:$0xff] }
  0x11   :  { %v105_v47 = vld [vmem:[#allocation3] sm:$0xff] }
  0x60   :  { %v120_v36 = vpop.permute.xlu2 %119 }
  0x61   :  { %vm122_vm10 = vcmp.eq.s32.totalorder %v120_v36, %v258_v34 }
  0x62   :  { %vm350_vm11 = vmand %vm122_vm10, %vm152_vm9 }
  0x63   :  { %v248_v39 = vsel %vm350_vm11, 1.0, %v300_v38 }
  0x64   :  { %v171_v40 = vsel %vm106_vm13, %v248_v39, 0.0 }
  0x65   :  { %172 = vadd.xlane.f32.xlu2 %v171_v40 }
  0x7b   :  { %v40_v6 = vpop.xlane.xlu0 %39 }
  0x7c   :  { %v41_v7 = vmax.f32 %v40_v6, 1e-24  ;;  %v161_v6 = vld [vmem:[#allocation5] sm:$0xff] }
  0x7e   :  { %259 = vrsqrt.f32 %v41_v7  ;;  %vm48_vm2 = vweird.f32 %v41_v7 }
  0x83   :  { %v65_v10 = vpop.xlane.xlu0 %64 }
  0x84   :  { %v260_v11 = vpop.eup %259  ;;  %v66_v12 = vmax.f32 %v65_v10, 1e-24 }
  0x85   :  { %v43_v13 = vmul.f32 %v260_v11, %v41_v7  ;;  %vm49_vm1 = vweird.f32 %v260_v11 }
  0x86   :  { %261 = vrsqrt.f32 %v66_v12  ;;  %vm50_vm3 = vmor %vm48_vm2, %vm49_vm1  ;;  %vm73_vm5 = vweird.f32 %v66_v12 }
  0x87   :  { %v44_v14 = vmul.f32 %v260_v11, %v43_v13 }
  0x89   :  { %v45_v15 = vmul.f32 0.5, %v44_v14 }
  0x8b   :  { %v46_v16 = vsub.f32 1.5, %v45_v15 }
  0x8c   :  { %v262_v17 = vpop.eup %261 }
  0x8d   :  { %v47_v18 = vmul.f32 %v260_v11, %v46_v16  ;;  %v68_v19 = vmul.f32 %v262_v17, %v66_v12  ;;  %vm74_vm4 = vweird.f32 %v262_v17 }
  0x8e   :  { %vm75_vm6 = vmor %vm73_vm5, %vm74_vm4 }
  0x8f   :  { %v51_v20 = vsel %vm50_vm3, %v260_v11, %v47_v18  ;;  %v69_v21 = vmul.f32 %v262_v17, %v68_v19 }
  0x90   :  { %v52_v22 = vmul.f32 10.0, %v51_v20 }
  0x91   :  { %v70_v23 = vmul.f32 0.5, %v69_v21 }
  0x92   :  { %v53_v24 = vmul.f32 %v52_v22, %v35_v0  ;;  %v154_v0 = vld [vmem:[#allocation4] sm:$0xff] }
  0x93   :  { %v71_v25 = vsub.f32 1.5, %v70_v23 }
  0x94   :  { %54 = vst.msk [vmem:[#allocation2] sm:$0xff] %vm37_vm0, %v53_v24 }
  0x95   :  { %v72_v26 = vmul.f32 %v262_v17, %v71_v25 }
  0x97   :  { %v76_v27 = vsel %vm75_vm6, %v262_v17, %v72_v26 }
  0x98   :  { %v77_v28 = vmul.f32 %v76_v27, %v60_v2 }
  0x9a   :  { %246 = vmatpush.xpose.msk.msra.mxu0 %vm37_vm0, %v77_v28 }
  0x9b   :  { %v78_v29 = vld [vmem:[#allocation2] sm:$0xff] }
  0x9d   :  { %247 = vmatmul.msk.f32.vlgmr.msra.gmra.mxu0 %vm37_vm0, %v78_v29 }
  0xd8   :  { %v173_v45 = vpop.xlane.xlu2 %172 }
  0xd9   :  { %v174_v46 = vadd.f32 %v173_v45, %v168_v44 }
  0xdb   :  { %175 = vst.msk [vmem:[#allocation6] sm:$0xff] %vm55_vm12, %v174_v46 }
  0xe2   :  { %v217_v60 = vld [vmem:[#allocation6] sm:$0xff] }
  0xe3   :  { %v218_v61 = vadd.f32 1.0, %v217_v60 }
  0xe5   :  { %v224_v62 = vadd.f32 1e-06, %v218_v61 }
  0xe7   :  { %vm230_vm14 = vweird.f32 %v224_v62  ;;  %v236_v14 = vand.u32 2147483648, %v224_v62  ;;  %v234_v16 = vand.u32 2147483647, %v224_v62 }
  0xe9   :  { %v237_v21 = vor.u32 1.1754944e-38, %v236_v14  ;;  %vm235_vm1 = vcmp.eq.f32.partialorder %v234_v16, 8.507059e+37 }
 0x11a   :  { %v102_v41 = vpop.f32.mrf.mxu0 }
 0x11b   :  { %v107_v42 = vsel %vm106_vm13, %v102_v41, -inf  ;;  %v162_v57 = vsel %vm350_vm11, %v102_v41, 0.0 }
 0x11c   :  { %108 = vmax.xlane.f32.xlu1 %v107_v42  ;;  %v163_v58 = vsel %vm106_vm13, %v162_v57, 0.0 }
 0x18f   :  { %v109_v48 = vpop.xlane.xlu1 %108 }
 0x190   :  { %v110_v49 = vmax.f32 %v105_v47, %v109_v48 }
 0x192   :  { %v111_v50 = vsub.f32 %v105_v47, %v110_v49  ;;  %115 = vst.msk [vmem:[#allocation3] sm:$0xff] %vm55_vm12, %v110_v49  ;;  %145 = vperm.xlu1 %255, %v110_v49  }
 0x194   :  { %v112_v59 = vmul.f32 1.442695, %v111_v50 }
 0x199   :  { %v212_v13 = vld [vmem:[#allocation3] sm:$0xff] }
 0x19a   :  { %v220_v19 = vmul.f32 %v217_v60, %v212_v13 }
 0x204   :  { %v146_v51 = vpop.permute.xlu1 %145 }
 0x205   :  { %v148_v52 = vsub.f32 %v102_v41, %v146_v51 }
 0x207   :  { %v149_v53 = vmul.f32 1.442695, %v148_v52 }
 0x209   :  { %263 = vpow2.f32 %v149_v53 }
 0x20a   :  { %265 = vpow2.f32 %v112_v59 }
 0x20b   :  { %267 = vrcp.f32 %v224_v62 }
 0x20f   :  { %v264_v54 = vpop.eup %263 }
 0x210   :  { %v151_v55 = vsel %vm344_vm7, 0.0, %v264_v54  ;;  %v266_v63 = vpop.eup %265 }
 0x211   :  { %v156_v56 = vsel %vm106_vm13, %v151_v55, 0.0  ;;  %v155_v1 = vmul.f32 %v266_v63, %v154_v0  ;;  %v268_v4 = vpop.eup %267 }
 0x212   :  { %157 = vadd.xlane.f32.xlu0 %v156_v56  ;;  %v226_v5 = vmul.f32 %v268_v4, %v224_v62  ;;  %vm231_vm15 = vweird.f32 %v268_v4 }
 0x213   :  { %vm232_vm0 = vmor %vm230_vm14, %vm231_vm15 }
 0x214   :  { %v227_v9 = vsub.f32 1.0, %v226_v5 }
 0x216   :  { %v228_v12 = vmul.f32 %v268_v4, %v227_v9 }
 0x218   :  { %v229_v15 = vadd.f32 %v268_v4, %v228_v12 }
 0x21a   :  { %164 = vadd.xlane.f32.xlu0 %v163_v58  ;;  %v233_v22 = vsel %vm232_vm0, %v268_v4, %v229_v15 }
 0x21b   :  { %v238_v26 = vsel %vm235_vm1, %v237_v21, %v233_v22 }
 0x285   :  { %v158_v2 = vpop.xlane.xlu0 %157 }
 0x286   :  { %v159_v3 = vadd.f32 %v158_v2, %v155_v1 }
 0x288   :  { %160 = vst.msk [vmem:[#allocation4] sm:$0xff] %vm55_vm12, %v159_v3 }
 0x28d   :  { %v165_v7 = vpop.xlane.xlu0 %164 }
 0x28e   :  { %v166_v8 = vadd.f32 %v165_v7, %v161_v6 }
 0x28f   :  { %v213_v10 = vld [vmem:[#allocation4] sm:$0xff] }
 0x290   :  { %v214_v11 = vadd.f32 1e-06, %v213_v10  ;;  %167 = vst.msk [vmem:[#allocation5] sm:$0xff] %vm55_vm12, %v166_v8 }
 0x292   :  { %269 = vlog2.f32 %v214_v11 }
 0x297   :  { %v219_v18 = vld [vmem:[#allocation5] sm:$0xff] }
 0x298   :  { %v270_v17 = vpop.eup %269  ;;  %v221_v23 = vsub.f32 %v219_v18, %v220_v19 }
 0x299   :  { %v216_v20 = vmul.f32 0.6931472, %v270_v17 }
 0x29b   :  { %v222_v24 = vmul.f32 %v218_v61, %v216_v20 }
 0x29d   :  { %v223_v25 = vsub.f32 %v221_v23, %v222_v24 }
 0x29f   :  { %v239_v27 = vmul.f32 %v238_v26, %v223_v25 }
 0x2a1   :  { %240 = vst.msk [vmem:[%s380_s4] sm:$0xff] %vm55_vm12, %v239_v27 }
 0x2a2   :  { %245 = vsyncpa [#allocation8], 1 }

</bundles_post_ra>
